<compile_context>
chip_gen: v6e
topology: v6e:2x2x1
jax: 0.10.0
libtpu: 0.0.40
codegen_flags: <defaults>
</compile_context>

<pallas_src>
import math
import functools

import jax
import jax.numpy as jnp
from jax import lax
from jax.experimental import pallas as pl
from jax.experimental.pallas import tpu as pltpu


def _round_up(x, m):
    return (x + m - 1) // m * m


# ---------------------------------------------------------------------------
# Pass 1: inv_norm[e] = rsqrt(sum_c kernel[e, c]^2)   (dim=1 norm of the weight)
# ---------------------------------------------------------------------------
def _row_inv_norm_kernel(w_ref, inv_ref):
    k = pl.program_id(0)

    @pl.when(k == 0)
    def _init():
        inv_ref[...] = jnp.zeros_like(inv_ref)

    w = w_ref[...].astype(jnp.float32)                     # (E, TILE_C)
    inv_ref[...] += jnp.sum(w * w, axis=1, keepdims=True)  # accumulate (E, 1)

    @pl.when(k == pl.num_programs(0) - 1)
    def _finalize():
        inv_ref[...] = lax.rsqrt(inv_ref[...])             # EUP rsqrt, no divide


# ---------------------------------------------------------------------------
# Pass 2: normalized matmul + margin + label scatter, tiled over C.
# ---------------------------------------------------------------------------
def _arcface_kernel(emb_ref, inv_ref, label_ref, w_ref, out_ref, *,
                    cos_m, sin_m, mm, threshold, scalar, tile_c, use_bf16):
    j = pl.program_id(0)

    inv = inv_ref[...]                                     # (E, 1) f32, resident
    w_n = w_ref[...].astype(jnp.float32) * inv             # normalize in f32
    emb = emb_ref[...]                                     # (B, E), resident

    if use_bf16:
        cos_theta = jnp.dot(emb.astype(jnp.bfloat16), w_n.astype(jnp.bfloat16),
                            preferred_element_type=jnp.float32)
    else:
        cos_theta = jnp.dot(emb.astype(jnp.float32), w_n,
                            preferred_element_type=jnp.float32)
    cos_theta = jnp.clip(cos_theta, -1.0, 1.0)

    sin_theta = jnp.sqrt(jnp.maximum(1.0 - cos_theta * cos_theta, 0.0))
    cos_theta_m = cos_theta * cos_m - sin_theta * sin_m
    cos_theta_m = jnp.where(cos_theta - threshold <= 0.0,
                            cos_theta - mm, cos_theta_m)

    # Tile-aware one-hot scatter: global class index = lane iota + tile offset.
    Bp, Tc = out_ref.shape
    class_idx = lax.broadcasted_iota(jnp.int32, (Bp, Tc), 1) + j * tile_c
    one_hot = class_idx == label_ref[...]                  # (B, 1) int32 labels
    out = jnp.where(one_hot, cos_theta_m, cos_theta)

    out_ref[...] = (out * scalar).astype(out_ref.dtype)


# ---------------------------------------------------------------------------
# Wrapper
# ---------------------------------------------------------------------------
def arcface_forward(embeddings, kernel, label, *, scalar=64.0, margin=0.5,
                    tile_c=None, use_bf16=False, weight_buffer_count=None,
                    vmem_budget_bytes=8 * 1024 * 1024,
                    vmem_limit_bytes=32 * 1024 * 1024):
    """Pallas ArcFace forward.

    embeddings: (B, E) float32
    kernel:     (E, C) float32 parameter
    label:      (B,)   int32
    returns:    (B, C) float32 scaled margin logits
    """
    B, E = embeddings.shape
    E2, C = kernel.shape
    assert E == E2

    cos_m = math.cos(margin)
    sin_m = math.sin(margin)
    mm = sin_m * margin
    threshold = math.cos(math.pi - margin)

    # ---- tile selection (lane-dense, VMEM-budgeted, per-generation override) ----
    B_pad = _round_up(max(B, 8), 8)
    w_bytes = 2 if use_bf16 else 4
    if tile_c is None:
        # double-buffered weight tile + double-buffered output tile per column
        per_col = 2 * E * w_bytes + 2 * B_pad * 4
        tile_c = max(128, (vmem_budget_bytes // per_col) // 128 * 128)
    tile_c = _round_up(min(tile_c, _round_up(C, 128)), 128)
    C_pad = _round_up(C, tile_c)
    num_tiles = C_pad // tile_c

    # ---- pad operands (zero columns don't change the dim=1 norm; padded rows
    #      and columns are sliced off at the end) ----
    emb = embeddings.astype(jnp.float32)
    if B_pad != B:
        emb = jnp.pad(emb, ((0, B_pad - B), (0, 0)))
    w = kernel.astype(jnp.bfloat16 if use_bf16 else jnp.float32)
    if C_pad != C:
        w = jnp.pad(w, ((0, 0), (0, C_pad - C)))
    lab = label.astype(jnp.int32)
    if B_pad != B:
        lab = jnp.pad(lab, ((0, B_pad - B),))
    lab2 = lab.reshape(B_pad, 1)

    # ---- pass 1: (E, 1) inverse row norms ----
    inv_norm = pl.pallas_call(
        _row_inv_norm_kernel,
        out_shape=jax.ShapeDtypeStruct((E, 1), jnp.float32),
        grid=(num_tiles,),
        in_specs=[pl.BlockSpec((E, tile_c), lambda k: (0, k))],
        out_specs=pl.BlockSpec((E, 1), lambda k: (0, 0)),
        compiler_params=pltpu.CompilerParams(
            dimension_semantics=("arbitrary",),
            vmem_limit_bytes=vmem_limit_bytes),
    )(w)

    # ---- pass 2: tiled matmul + margin + scatter ----
    if weight_buffer_count is None:
        w_spec = pl.BlockSpec((E, tile_c), lambda j: (0, j))
    else:  # e.g. 3 on v7x if DMA issue latency is exposed
        w_spec = pl.BlockSpec((E, tile_c), lambda j: (0, j),
                              pipeline_mode=pl.Buffered(weight_buffer_count))

    kern = functools.partial(
        _arcface_kernel, cos_m=cos_m, sin_m=sin_m, mm=mm, threshold=threshold,
        scalar=scalar, tile_c=tile_c, use_bf16=use_bf16)

    out = pl.pallas_call(
        kern,
        out_shape=jax.ShapeDtypeStruct((B_pad, C_pad), jnp.float32),
        grid=(num_tiles,),
        in_specs=[
            pl.BlockSpec((B_pad, E), lambda j: (0, 0)),   # embeddings, resident
            pl.BlockSpec((E, 1), lambda j: (0, 0)),       # inv_norm, resident
            pl.BlockSpec((B_pad, 1), lambda j: (0, 0)),   # labels, resident
            w_spec,                                       # weight tile, streamed
        ],
        out_specs=pl.BlockSpec((B_pad, tile_c), lambda j: (0, j)),
        compiler_params=pltpu.CompilerParams(
            dimension_semantics=("parallel",),            # split C tiles across TCs
            vmem_limit_bytes=vmem_limit_bytes),
    )(emb, inv_norm, lab2, w)

    return out[:B, :C]


def init_arcface_weight(key, embedding_size, num_of_classes):
    """Mimic: Tensor(E, C).uniform_(-1, 1).renorm_(2, 1, 1e-5).mul_(1e5)."""
    w = jax.random.uniform(key, (embedding_size, num_of_classes),
                           minval=-1.0, maxval=1.0, dtype=jnp.float32)
    col_norm = jnp.linalg.norm(w, axis=0, keepdims=True)   # per-column L2
    scale = jnp.where(col_norm > 1e-5, 1e-5 / col_norm, 1.0)
    return w * scale * 1e5


def _reference_jax(embeddings, kernel, label, scalar=64.0, margin=0.5,
                   use_bf16=False):
    """Pure-JAX reference mirroring the PyTorch forward."""
    cos_m, sin_m = math.cos(margin), math.sin(margin)
    mm = sin_m * margin
    threshold = math.cos(math.pi - margin)
    if use_bf16:
        w = kernel.astype(jnp.bfloat16).astype(jnp.float32)
    else:
        w = kernel.astype(jnp.float32)
    row_norm = jnp.sqrt(jnp.sum(w * w, axis=1, keepdims=True))   # torch.norm(k,2,1,True)
    w_n = w / row_norm
    if use_bf16:
        cos_theta = jnp.dot(embeddings.astype(jnp.bfloat16), w_n.astype(jnp.bfloat16),
                            preferred_element_type=jnp.float32)
    else:
        cos_theta = jnp.dot(embeddings, w_n, preferred_element_type=jnp.float32)
    cos_theta = jnp.clip(cos_theta, -1.0, 1.0)
    sin_theta = jnp.sqrt(jnp.maximum(1.0 - cos_theta ** 2, 0.0))
    cos_theta_m = cos_theta * cos_m - sin_theta * sin_m
    cos_theta_m = jnp.where(cos_theta - threshold <= 0.0,
                            cos_theta - mm, cos_theta_m)
    one_hot = jax.nn.one_hot(label, cos_theta.shape[1], dtype=jnp.bool_)
    out = jnp.where(one_hot, cos_theta_m, cos_theta)
    return out * scalar


if __name__ == "__main__":
    # Small, module-consistent shapes; B and C deliberately unaligned to
    # exercise the padding + multi-tile grid paths.
    B, E, C = 13, 64, 1000
    key = jax.random.PRNGKey(0)
    k_w, k_e, k_l = jax.random.split(key, 3)

    kernel = init_arcface_weight(k_w, E, C)
    emb = jax.random.normal(k_e, (B, E), dtype=jnp.float32)
    emb = emb / jnp.linalg.norm(emb, axis=1, keepdims=True)
    label = jax.random.randint(k_l, (B,), 0, C, dtype=jnp.int32)

    ref = _reference_jax(emb, kernel, label)

    # f32 path, small tile to exercise the C grid (8 tiles of 128).
    out = jax.block_until_ready(arcface_forward(emb, kernel, label, tile_c=128))
    assert out.shape == (B, C)
    assert jnp.allclose(out, ref, atol=1e-3, rtol=1e-4)

    # f32 path, auto-sized tile (single tile at this size).
    out2 = jax.block_until_ready(arcface_forward(emb, kernel, label))
    assert jnp.allclose(out2, ref, atol=1e-3, rtol=1e-4)

    # bf16 weight-streaming path (f32 accumulation) vs a matching bf16 reference.
    out_bf = jax.block_until_ready(
        arcface_forward(emb, kernel, label, tile_c=256, use_bf16=True))
    ref_bf = _reference_jax(emb, kernel, label, use_bf16=True)
    assert jnp.allclose(out_bf, ref_bf, atol=5e-2, rtol=5e-3)

    print("KERNEL_OK")
</pallas_src>

<mosaic_0001>
module attributes {stable_mosaic.version = 11 : i64} {
  func.func @_row_inv_norm_kernel(%arg0: i32, %arg1: memref<64x128xf32, #tpu.memory_space<vmem>>, %arg2: memref<64x1xf32, #tpu.memory_space<vmem>>) attributes {dimension_semantics = [#tpu.dimension_semantics<arbitrary>], iteration_bounds = array<i64: 8>, scalar_prefetch = 0 : i64, scratch_operands = 0 : i64, tpu.core_type = #tpu.core_type<tc>, window_params = [{transform_indices = @transform_0, window_bounds = array<i64: 64, 128>}, {pipeline_mode = #tpu.pipeline_mode<synchronous>, transform_indices = @transform_1, window_bounds = array<i64: 64, 1>}]} {
    %c0_i32 = arith.constant 0 : i32
    %0 = arith.cmpi eq, %arg0, %c0_i32 : i32
    %1 = arith.extui %0 : i1 to i32
    %c0_i32_0 = arith.constant 0 : i32
    %2 = arith.cmpi ne, %1, %c0_i32_0 : i32
    scf.if %2 {
      %cst_7 = arith.constant 0.000000e+00 : f32
      %13 = vector.broadcast %cst_7 : f32 to vector<64x1xf32>
      %c0_8 = arith.constant 0 : index
      %c0_9 = arith.constant 0 : index
      %14 = vector.load %arg2[%c0_8, %c0_9] : memref<64x1xf32, #tpu.memory_space<vmem>>, vector<64x1xf32>
      tpu.vector_store %arg2[%c0_8, %c0_9], %13 {strides = array<i32>} : memref<64x1xf32, #tpu.memory_space<vmem>>, vector<64x1xf32>,
    } else {
    }
    %c0 = arith.constant 0 : index
    %c0_1 = arith.constant 0 : index
    %3 = vector.load %arg1[%c0, %c0_1] : memref<64x128xf32, #tpu.memory_space<vmem>>, vector<64x128xf32>
    %c0_2 = arith.constant 0 : index
    %c0_3 = arith.constant 0 : index
    %4 = vector.load %arg2[%c0_2, %c0_3] : memref<64x1xf32, #tpu.memory_space<vmem>>, vector<64x1xf32>
    %5 = arith.mulf %3, %3 : vector<64x128xf32>
    %cst = arith.constant dense<0.000000e+00> : vector<64xf32>
    %6 = vector.multi_reduction <add>, %5, %cst [1] : vector<64x128xf32> to vector<64xf32>
    %7 = vector.shape_cast %6 : vector<64xf32> to vector<64x1xf32>
    %8 = arith.addf %4, %7 : vector<64x1xf32>
    %c0_4 = arith.constant 0 : index
    %c0_5 = arith.constant 0 : index
    %9 = vector.load %arg2[%c0_4, %c0_5] : memref<64x1xf32, #tpu.memory_space<vmem>>, vector<64x1xf32>
    tpu.vector_store %arg2[%c0_4, %c0_5], %8 {strides = array<i32>} : memref<64x1xf32, #tpu.memory_space<vmem>>, vector<64x1xf32>,
    %c7_i32 = arith.constant 7 : i32
    %10 = arith.cmpi eq, %arg0, %c7_i32 : i32
    %11 = arith.extui %10 : i1 to i32
    %c0_i32_6 = arith.constant 0 : i32
    %12 = arith.cmpi ne, %11, %c0_i32_6 : i32
    scf.if %12 {
      %c0_7 = arith.constant 0 : index
      %c0_8 = arith.constant 0 : index
      %13 = vector.load %arg2[%c0_7, %c0_8] : memref<64x1xf32, #tpu.memory_space<vmem>>, vector<64x1xf32>
      %14 = math.rsqrt %13 : vector<64x1xf32>
      %c0_9 = arith.constant 0 : index
      %c0_10 = arith.constant 0 : index
      %15 = vector.load %arg2[%c0_9, %c0_10] : memref<64x1xf32, #tpu.memory_space<vmem>>, vector<64x1xf32>
      tpu.vector_store %arg2[%c0_9, %c0_10], %14 {strides = array<i32>} : memref<64x1xf32, #tpu.memory_space<vmem>>, vector<64x1xf32>,
    } else {
    }
    return
  }
  func.func @transform_0(%arg0: i32) -> (i32, i32) {
    %c0_i32 = arith.constant 0 : i32
    %c0_i32_0 = arith.constant 0 : i32
    return %c0_i32, %arg0 : i32, i32
  }
  func.func @transform_1(%arg0: i32) -> (i32, i32) {
    %c0_i32 = arith.constant 0 : i32
    %c0_i32_0 = arith.constant 0 : i32
    %c0_i32_1 = arith.constant 0 : i32
    return %c0_i32, %c0_i32_0 : i32, i32
  }
}

</mosaic_0001>

<bundles_post_ra>
// kernel: tpu_custom_call.1
= control target key start
LH: loop header
LB: loop body
LE: loop exit
PB: predicated region body
PF: predicated region fallthrough
CT: control target
= control target key end

     0   :  { %6 = vsyncpa [#allocation3], 0  ;;  %s649_s0 = inlined_call_operand.hbm [shape: f32[64,1024], index: 0, kind: input, shape index: {}]   ;;  %s650_s1 = inlined_call_operand.vmem [shape: f32[64,1], index: 1, kind: output, shape index: {}]  }
   0x1   :  { %8 = vsyncpa [#allocation3 + $0x1], 0  ;;  %s407_s6 = smov 0   ;;  %s409_s7 = smov 0  }
   0x2   :  { %s411_s8 = smov 0   ;;  %s413_s9 = smov 0  }
   0x3 LB: > { %s426_s10 = sadd.s32 4294967295, %s390_s9   ;;  %s429_s11 = sadd.s32 1, %s390_s9   ;;  %s390_s9 = sphi %s413_s9, %s658_s9   ;;  %s386_s8 = sphi %s411_s8, %s657_s8   ;;  %s382_s7 = sphi %s409_s7, %s656_s7   ;;  %s378_s6 = sphi %s407_s6, %s655_s6  }
   0x4   : > { %s18_s12 = ssub.s32 %s390_s9, %s429_s11  ;;  %s21_s13 = sadd.s32 1, %s386_s8 }
   0x5   : > { %p19_p0 = scmp.eq.s32.totalorder %s18_s12, 0  ;;  %p28_p1 = scmp.ne.s32.totalorder %s386_s8, %s382_s7 }
   0x6   : > { %p29_p2 = scmp.eq.s32.totalorder %s390_s9, 0  ;;  %p34_p3 = scmp.ne.s32.totalorder %s382_s7, %s378_s6 }
   0x7   : > { %s439_s14 = scalar_select %p19_p0, %s386_s8, %s21_s13  }
   0x8   : > { %p30_p4 = por %p29_p2, %p28_p1  ;;  %p35_p5 = scmp.eq.s32.totalorder %s426_s10, 0 }
   0x9   : > { %p275_p6 = scmp.lt.s32.totalorder %s390_s9, 8  ;;  %s79_s16 = sand.u32 1, %s386_s8  }
   0xa   : > { %p443_p7 = por %p35_p5, %p34_p3  ;;  %s261_s17 = sshll.u32 %s79_s16, 6 }
   0xb   : > { %s262_s18 = sshll.u32 %s390_s9, 7  ;;  %s83_s22 = scalar_lea.vmem [#allocation2], %s261_s17 }
   0xc   : > { %s652_s15 = scalar_select %p443_p7, 1, 0 }
   0xd   : > { %s452_s21 = scalar_lea.hbm %s649_s0, %s262_s18  ;;  %s89_s23 = sshll.u32 %s83_s22, 4  ;;  %s454_s23 = int_to_ptr.vmem [resolvable:$true] %s89_s23 }
   0xe   : > { %p456_p8 = pnand %p275_p6, %p30_p4  ;;  %s460_s25 = scalar_lea.sflag [#allocation3], %s79_s16 }
   0xf   : > { %s328_s26 = scalar_lea.hbm %s452_s21, 1024  ;;  %s333_s29 = scalar_lea.hbm %s649_s0, 8192 }
  0x10   : > { %p329_p9 = scmp.ne.s32.totalorder %s452_s21, %s328_s26  ;;  %p330_p10 = pneg %p456_p8 }
  0x11   : > { %p334_p13 = scmp.lt.s32.totalorder %s452_s21, %s649_s0  ;;  %p335_p0 = scmp.lt.s32.totalorder %s333_s29, %s328_s26 }
  0x12   : > { %p331_p11 = pnand %p330_p10, %p329_p9 }
  0x13   : > { %p336_p1 = por %p335_p0, %p334_p13 }
  0x14   : > { %p332_p12 = pneg %p331_p11 }
  0x16   : > { %p337_p2 = pnand %p336_p1, %p332_p12 }
  0x18   : > { %340 = shalt.err (!%p337_p2)
}
  0x19   : > { %s341_s3 = scalar_lea.vmem %s454_s23, 1024  ;;  %s392_s4 = smov [#allocation2]  }
  0x1a   : > { %p342_p3 = scmp.ne.s32.totalorder %s454_s23, %s341_s3  ;;  %s346_s5 = sshll.u32 %s392_s4, 4  ;;  %s347_s5 = int_to_ptr.vmem [resolvable:$false] %s346_s5 }
  0x1b   : > { %s348_s6 = scalar_lea.vmem %s347_s5, 2048  ;;  %p349_p6 = scmp.lt.s32.totalorder %s454_s23, %s347_s5 }
  0x1c   : > { %p344_p4 = pnand %p342_p3, %p330_p10  ;;  %p350_p9 = scmp.lt.s32.totalorder %s348_s6, %s341_s3 }
  0x1e   : > { %p345_p5 = pneg %p344_p4  ;;  %p351_p11 = por %p350_p9, %p349_p6 }
  0x20   : > { %p352_p7 = pnand %p351_p11, %p345_p5 }
  0x22   : > { %355 = shalt.err (!%p352_p7)
}
  0x23   : > { %s393_s12 = smov 1024   ;;  %s394_s13 = smov 128  }
  0x24   : > { %s395_s16 = smov 8   ;;  %p263_p10 = scmp.ge.s32.totalorder %s390_s9, 1 }
  0x25   : > { %274 = dma.hbm_to_vmem [thread:$0]  (!%p456_p8), %s452_s21, 1024, %s454_s23, %s460_s25, %s393_s12, %s394_s13, %s395_s16  }
  0x26   : > { %p97_p12 = scmp.lt.s32.totalorder %s390_s9, 9 }
  0x28   : > { %p98_p13 = pnand %p263_p10, %p97_p12 }
  0x29   : > { %s103_s17 = sand.u32 (!%p98_p13), 1, %s382_s7   ;;  %p654_p7 = scmp.ne.s32.totalorder (!%p98_p13), %s652_s15, 0 }
  0x2a   : > { %101 = sbr.rel (%p98_p13) target bundleno = 239 (0xef), region = 24  ;;  %s264_s18 = sshll.u32 (!%p98_p13), %s103_s17, 6 }
  0x2b   : > { %s104_s19 = scalar_lea.sflag (!%p98_p13), [#allocation3], %s103_s17  ;;  %s484_s20 = scalar_lea.vmem (!%p98_p13), [#allocation2], %s264_s18 }
  0x2f   : > { %373 = dma.done.wait (%p654_p7), %s104_s19, 1024  }
  0x30   : > { %375 = vsyncadd (%p654_p7), %s104_s19, 4294966272  ;;  %p265_p0 = scmp.ne.s32.totalorder %s426_s10, 0 }
  0x32   : > { %124 = sbr.rel (%p265_p0) target bundleno = 60 (0x3c), region = 32 }
  0x37   : > { %vm125_vm0 = vcmask 7168   ;;  %v396_v0 = vmov 0.0  }
  0x38   : > { %126 = vst.msk [vmem:[%s650_s1] sm:$0xff] %vm125_vm0, %v396_v0  ;;  %127 = vst.msk [vmem:[%s650_s1 + $0x8] sm:$0xff] %vm125_vm0, %v396_v0 }
  0x39   : > { %128 = vst.msk [vmem:[%s650_s1 + $0x10] sm:$0xff] %vm125_vm0, %v396_v0  ;;  %129 = vst.msk [vmem:[%s650_s1 + $0x18] sm:$0xff] %vm125_vm0, %v396_v0 }
  0x3a   : > { %130 = vst.msk [vmem:[%s650_s1 + $0x20] sm:$0xff] %vm125_vm0, %v396_v0  ;;  %131 = vst.msk [vmem:[%s650_s1 + $0x28] sm:$0xff] %vm125_vm0, %v396_v0 }
  0x3b   : > { %132 = vst.msk [vmem:[%s650_s1 + $0x30] sm:$0xff] %vm125_vm0, %v396_v0  ;;  %133 = vst.msk [vmem:[%s650_s1 + $0x38] sm:$0xff] %vm125_vm0, %v396_v0 }
  0x3c PF: > { %v136_v1 = vld [vmem:[%s484_s20 + $0x10] sm:$0xff]  ;;  %v134_v2 = vld [vmem:[%s484_s20] sm:$0xff]  ;;  %v137_v3 = vld [vmem:[%s484_s20 + $0x18] sm:$0xff]  ;;  %vm182_vm1 = vcmask 7168   ;;  %p266_p8 = scmp.ne.s32.totalorder %s426_s10, 7 }
  0x3d   : > { %v152_v4 = vmul.f32 %v136_v1, %v136_v1  ;;  %v150_v5 = vmul.f32 %v134_v2, %v134_v2  ;;  %v135_v6 = vld [vmem:[%s484_s20 + $0x8] sm:$0xff]  ;;  %v153_v7 = vmul.f32 %v137_v3, %v137_v3  ;;  %v138_v10 = vld [vmem:[%s484_s20 + $0x20] sm:$0xff]  ;;  %v141_v13 = vld [vmem:[%s484_s20 + $0x38] sm:$0xff] }
  0x3e   : > { %v151_v8 = vmul.f32 %v135_v6, %v135_v6  ;;  %v139_v9 = vld [vmem:[%s484_s20 + $0x28] sm:$0xff]  ;;  %v154_v12 = vmul.f32 %v138_v10, %v138_v10  ;;  %v140_v14 = vld [vmem:[%s484_s20 + $0x30] sm:$0xff]  ;;  %v157_v15 = vmul.f32 %v141_v13, %v141_v13 }
  0x3f   : > { %162 = vadd.xlane.f32.xlu1 %v152_v4  ;;  %158 = vadd.xlane.f32.xlu0 %v150_v5  ;;  %v155_v11 = vmul.f32 %v139_v9, %v139_v9  ;;  %v156_v16 = vmul.f32 %v140_v14, %v140_v14  ;;  %v142_v18 = vld [vmem:[%s650_s1] sm:$0xff]  ;;  %v143_v24 = vld [vmem:[%s650_s1 + $0x8] sm:$0xff] }
  0x40   : > { %v144_v17 = vld [vmem:[%s650_s1 + $0x10] sm:$0xff]  ;;  %v145_v23 = vld [vmem:[%s650_s1 + $0x18] sm:$0xff] }
  0x41   : > { %v147_v29 = vld [vmem:[%s650_s1 + $0x28] sm:$0xff]  ;;  %v146_v30 = vld [vmem:[%s650_s1 + $0x20] sm:$0xff] }
  0x42   : > { %v149_v35 = vld [vmem:[%s650_s1 + $0x38] sm:$0xff]  ;;  %v148_v36 = vld [vmem:[%s650_s1 + $0x30] sm:$0xff] }
  0x43   : > { %164 = vadd.xlane.f32.xlu1 %v153_v7  ;;  %160 = vadd.xlane.f32.xlu0 %v151_v8 }
  0x47   : > { %168 = vadd.xlane.f32.xlu1 %v155_v11  ;;  %166 = vadd.xlane.f32.xlu0 %v154_v12 }
  0x4b   : > { %172 = vadd.xlane.f32.xlu1 %v157_v15  ;;  %170 = vadd.xlane.f32.xlu0 %v156_v16 }
  0xc8   : > { %v163_v19 = vpop.xlane.xlu1 %162  ;;  %v159_v20 = vpop.xlane.xlu0 %158 }
  0xc9   : > { %v176_v21 = vadd.f32 %v163_v19, %v144_v17  ;;  %v174_v22 = vadd.f32 %v159_v20, %v142_v18 }
  0xcb   : > { %185 = vst.msk [vmem:[%s650_s1 + $0x10] sm:$0xff] %vm182_vm1, %v176_v21  ;;  %183 = vst.msk [vmem:[%s650_s1] sm:$0xff] %vm182_vm1, %v174_v22 }
  0xcc   : > { %v165_v25 = vpop.xlane.xlu1 %164  ;;  %v161_v26 = vpop.xlane.xlu0 %160 }
  0xcd   : > { %v177_v27 = vadd.f32 %v165_v25, %v145_v23  ;;  %v175_v28 = vadd.f32 %v161_v26, %v143_v24 }
  0xcf   : > { %186 = vst.msk [vmem:[%s650_s1 + $0x18] sm:$0xff] %vm182_vm1, %v177_v27  ;;  %184 = vst.msk [vmem:[%s650_s1 + $0x8] sm:$0xff] %vm182_vm1, %v175_v28 }
  0xd0   : > { %v169_v31 = vpop.xlane.xlu1 %168  ;;  %v167_v32 = vpop.xlane.xlu0 %166 }
  0xd1   : > { %v179_v33 = vadd.f32 %v169_v31, %v147_v29  ;;  %v178_v34 = vadd.f32 %v167_v32, %v146_v30 }
  0xd3   : > { %188 = vst.msk [vmem:[%s650_s1 + $0x28] sm:$0xff] %vm182_vm1, %v179_v33  ;;  %187 = vst.msk [vmem:[%s650_s1 + $0x20] sm:$0xff] %vm182_vm1, %v178_v34  ;;  %194 = sbr.rel (%p266_p8) target bundleno = 239 (0xef), region = 36 }
  0xd4   : > { %v173_v37 = vpop.xlane.xlu1 %172  ;;  %v171_v38 = vpop.xlane.xlu0 %170 }
  0xd5   : > { %v181_v39 = vadd.f32 %v173_v37, %v149_v35  ;;  %v180_v40 = vadd.f32 %v171_v38, %v148_v36 }
  0xd7   : > { %190 = vst.msk [vmem:[%s650_s1 + $0x38] sm:$0xff] %vm182_vm1, %v181_v39  ;;  %189 = vst.msk [vmem:[%s650_s1 + $0x30] sm:$0xff] %vm182_vm1, %v180_v40 }
  0xd8   : > { %v195_v41 = vld [vmem:[%s650_s1] sm:$0xff]  ;;  %v196_v42 = vld [vmem:[%s650_s1 + $0x8] sm:$0xff]  ;;  %v197_v43 = vld [vmem:[%s650_s1 + $0x10] sm:$0xff] }
  0xd9   : > { %312 = vrsqrt.f32 %v195_v41  ;;  %v198_v44 = vld [vmem:[%s650_s1 + $0x18] sm:$0xff] }
  0xda   : > { %314 = vrsqrt.f32 %v196_v42  ;;  %v199_v45 = vld [vmem:[%s650_s1 + $0x20] sm:$0xff]  ;;  %v200_v46 = vld [vmem:[%s650_s1 + $0x28] sm:$0xff] }
  0xdb   : > { %316 = vrsqrt.f32 %v197_v43 }
  0xdc   : > { %318 = vrsqrt.f32 %v198_v44 }
  0xdd   : > { %320 = vrsqrt.f32 %v199_v45 }
  0xde   : > { %v201_v47 = vld [vmem:[%s650_s1 + $0x30] sm:$0xff]  ;;  %v202_v48 = vld [vmem:[%s650_s1 + $0x38] sm:$0xff]  ;;  %322 = vrsqrt.f32 %v200_v46 }
  0xdf   : > { %324 = vrsqrt.f32 %v201_v47 }
  0xe0   : > { %326 = vrsqrt.f32 %v202_v48 }
  0xe6   : > { %v313_v49 = vpop.eup %312 }
  0xe7   : > { %v315_v50 = vpop.eup %314  ;;  %211 = vst.msk [vmem:[%s650_s1] sm:$0xff] %vm182_vm1, %v313_v49 }
  0xe8   : > { %v317_v51 = vpop.eup %316  ;;  %212 = vst.msk [vmem:[%s650_s1 + $0x8] sm:$0xff] %vm182_vm1, %v315_v50 }
  0xe9   : > { %v319_v52 = vpop.eup %318  ;;  %213 = vst.msk [vmem:[%s650_s1 + $0x10] sm:$0xff] %vm182_vm1, %v317_v51 }
  0xea   : > { %v321_v53 = vpop.eup %320  ;;  %214 = vst.msk [vmem:[%s650_s1 + $0x18] sm:$0xff] %vm182_vm1, %v319_v52 }
  0xeb   : > { %v323_v54 = vpop.eup %322  ;;  %215 = vst.msk [vmem:[%s650_s1 + $0x20] sm:$0xff] %vm182_vm1, %v321_v53 }
  0xec   : > { %v325_v55 = vpop.eup %324  ;;  %216 = vst.msk [vmem:[%s650_s1 + $0x28] sm:$0xff] %vm182_vm1, %v323_v54 }
  0xed   : > { %v327_v56 = vpop.eup %326  ;;  %217 = vst.msk [vmem:[%s650_s1 + $0x30] sm:$0xff] %vm182_vm1, %v325_v55 }
  0xee   : > { %218 = vst.msk [vmem:[%s650_s1 + $0x38] sm:$0xff] %vm182_vm1, %v327_v56 }
  0xef PF: > { %p11_p1 = scmp.ge.s32.totalorder %s429_s11, 10   ;;  %s655_s6 = smov %s382_s7 }
  0xf0   : > { %s656_s7 = smov %s386_s8  ;;  %s657_s8 = smov %s439_s14 }
  0xf1   : > { %s658_s9 = smov %s429_s11  ;;  %13 = sbr.rel (!%p11_p1) target bundleno = 3 (0x3), region = 68 }
  0xf6   :  { %230 = vsyncpa [#allocation3], 1 }
  0xf7   :  { %232 = vsyncpa [#allocation3 + $0x1], 1 }

</bundles_post_ra>
